<compile_context>
chip_gen: v7x
topology: tpu7x:2x2x1
jax: 0.10.0
libtpu: 0.0.40
codegen_flags: <defaults>
</compile_context>

<pallas_src>
import functools

import jax
import jax.numpy as jnp
import numpy as np
from jax.experimental import pallas as pl
from jax.experimental.pallas import tpu as pltpu

_FOLD = 128              # original rows folded into one lane-dense row
_SMALL_ELEMS = 64 * 1024  # below this, skip pallas and let XLA fuse a multiply


def _mul_kernel(feat_ref, inv_ref, out_ref):
    # [TB, L] tile * [1, L] reciprocal row (broadcast over sublanes) — VALU.
    out_ref[...] = feat_ref[...] * inv_ref[...]


@functools.lru_cache(maxsize=None)
def _inv_divisor_np(feat_dim, im_w, im_h, num_obj_classes, feat_version):
    """Per-column reciprocal divisor [F], numpy, cached per static config."""
    inv = np.ones((feat_dim,), dtype=np.float32)
    if feat_version in (1, 3):
        return inv  # identity
    if feat_version not in (2, 5):
        raise NotImplementedError(f"Unhandled version '{feat_version}'")
    num_obj_feats = num_obj_classes - 2
    num_obj_points = num_obj_feats * 2
    right_dist_idx2 = num_obj_points + 1
    left_dist_idx1 = num_obj_points + 2
    left_dist_idx2 = left_dist_idx1 + num_obj_points
    for start_idx, end_idx in zip([1, left_dist_idx1],
                                  [right_dist_idx2, left_dist_idx2]):
        inv[start_idx:end_idx:2] = 1.0 / im_w
        inv[start_idx + 1:end_idx:2] = 1.0 / im_h
    hands_dist_idx = left_dist_idx2
    inv[hands_dist_idx] = 1.0 / im_w
    inv[hands_dist_idx + 1] = 1.0 / im_h
    return inv


@functools.lru_cache(maxsize=None)
def _inv_divisor_folded_np(feat_dim, im_w, im_h, num_obj_classes, feat_version,
                           fold):
    """Lane-dense divisor row [F*fold]: divisor tiled across folded rows."""
    base = _inv_divisor_np(feat_dim, im_w, im_h, num_obj_classes, feat_version)
    return np.tile(base, fold)


def _pick_tile_rows(num_rows):
    """Folded-row tile: multiple of 8 (sublanes), <=256 (~5 MiB/buffer f32),
    and small enough that the grid has >=2 steps when there is enough work."""
    if num_rows <= 8:
        return num_rows  # full-extent block (allowed even if not /8)
    tb = ((num_rows + 1) // 2 + 7) // 8 * 8   # aim for ~2 steps
    tb = min(tb, 256, num_rows)
    return tb


def _pallas_rowwise_mul(x, inv_row):
    """x: [R, L] (L multiple of 128), inv_row: [1, L]. Returns x * inv_row."""
    R, L = x.shape
    tb = _pick_tile_rows(R)
    grid = (pl.cdiv(R, tb),)
    return pl.pallas_call(
        _mul_kernel,
        out_shape=jax.ShapeDtypeStruct((R, L), x.dtype),
        grid=grid,
        in_specs=[
            pl.BlockSpec((tb, L), lambda i: (i, 0)),
            # Constant index_map -> divisor row stays VMEM-resident across steps.
            pl.BlockSpec((1, L), lambda i: (0, 0)),
        ],
        out_specs=pl.BlockSpec((tb, L), lambda i: (i, 0)),
        compiler_params=pltpu.CompilerParams(
            # Row tiles are independent -> shard across v7x's two TensorCores.
            dimension_semantics=("parallel",),
        ),
    )(x, inv_row)


def normalize_pixel_pts(features, im_w, im_h, num_obj_classes, feat_version):
    """features: [B, F] float. Returns the normalized feature matrix."""
    B, F = features.shape

    # feat_version 1/3 are no-ops in the reference module: skip all HBM traffic.
    if feat_version in (1, 3):
        return features
    if feat_version not in (2, 5):
        raise NotImplementedError(f"Unhandled version '{feat_version}'")

    inv_np = _inv_divisor_np(F, im_w, im_h, num_obj_classes, feat_version)

    # Tiny inputs: a standalone pallas_call is pure launch/DMA-setup overhead;
    # let XLA fuse a broadcasted multiply instead.
    if B * F < _SMALL_ELEMS:
        inv = jnp.asarray(inv_np, dtype=features.dtype)
        return features * inv[None, :]

    main_rows = (B // _FOLD) * _FOLD
    tail_rows = B - main_rows

    parts = []
    if main_rows > 0:
        # Lane-dense fold: row-major contiguous reshape, [main, F] -> [main/128, F*128].
        folded = features[:main_rows].reshape(main_rows // _FOLD, F * _FOLD)
        inv_folded = jnp.asarray(
            _inv_divisor_folded_np(F, im_w, im_h, num_obj_classes, feat_version,
                                   _FOLD),
            dtype=features.dtype,
        ).reshape(1, F * _FOLD)
        out_folded = _pallas_rowwise_mul(folded, inv_folded)
        parts.append(out_folded.reshape(main_rows, F))
    if tail_rows > 0:
        # <128-row tail: plain JAX multiply (negligible work, avoids a ragged
        # pallas tail path).
        inv = jnp.asarray(inv_np, dtype=features.dtype)
        parts.append(features[main_rows:] * inv[None, :])

    if len(parts) == 1:
        return parts[0]
    return jnp.concatenate(parts, axis=0)


def _reference(features_np, im_w, im_h, num_obj_classes, feat_version):
    """Pure-numpy reference mirroring the PyTorch forward exactly."""
    feats = np.array(features_np, dtype=np.float32, copy=True)
    if feat_version in (2, 5):
        num_obj_feats = num_obj_classes - 2
        num_obj_points = num_obj_feats * 2
        right_dist_idx2 = num_obj_points + 1
        left_dist_idx1 = num_obj_points + 2
        left_dist_idx2 = left_dist_idx1 + num_obj_points
        for start_idx, end_idx in zip([1, left_dist_idx1],
                                      [right_dist_idx2, left_dist_idx2]):
            feats[:, start_idx:end_idx:2] = feats[:, start_idx:end_idx:2] / im_w
            feats[:, start_idx + 1:end_idx:2] = (
                feats[:, start_idx + 1:end_idx:2] / im_h
            )
        hands_dist_idx = left_dist_idx2
        feats[:, hands_dist_idx] = feats[:, hands_dist_idx] / im_w
        feats[:, hands_dist_idx + 1] = feats[:, hands_dist_idx + 1] / im_h
    return feats


if __name__ == "__main__":
    # Deterministic config (module __init__ args).
    im_w, im_h = 1280, 720
    num_obj_classes = 9          # -> num_obj_points = 14, hands_dist_idx = 30
    feat_version = 2
    F = 39                       # needs at least hands_dist_idx + 2 = 32 cols

    key = jax.random.PRNGKey(0)
    k_small, k_big = jax.random.split(key)

    # Case 1: tiny batch -> plain-JAX short-circuit path.
    B_small = 8
    feats_small = jax.random.uniform(
        k_small, (B_small, F), dtype=jnp.float32, minval=0.0, maxval=float(im_w))
    out_small = jax.block_until_ready(
        normalize_pixel_pts(feats_small, im_w, im_h, num_obj_classes,
                            feat_version))
    ref_small = _reference(np.asarray(feats_small), im_w, im_h,
                           num_obj_classes, feat_version)
    np.testing.assert_allclose(np.asarray(out_small), ref_small,
                               rtol=1e-6, atol=1e-6)

    # Case 2: batch large enough to hit the lane-dense Pallas path
    # (16 folded rows -> 2 grid steps of 8) plus a 5-row plain-JAX tail.
    B_big = 2053
    feats_big = jax.random.uniform(
        k_big, (B_big, F), dtype=jnp.float32, minval=0.0, maxval=float(im_w))
    out_big = jax.block_until_ready(
        normalize_pixel_pts(feats_big, im_w, im_h, num_obj_classes,
                            feat_version))
    ref_big = _reference(np.asarray(feats_big), im_w, im_h,
                         num_obj_classes, feat_version)
    # Note: x * (1/d) differs from x / d by ~1 ulp for 1/1280, 1/720.
    np.testing.assert_allclose(np.asarray(out_big), ref_big,
                               rtol=1e-6, atol=1e-6)

    # Case 3: feat_version 1/3 are identity (no kernel, no HBM pass).
    out_id = jax.block_until_ready(
        normalize_pixel_pts(feats_small, im_w, im_h, num_obj_classes, 1))
    np.testing.assert_array_equal(np.asarray(out_id), np.asarray(feats_small))

    print("KERNEL_OK")
</pallas_src>

<mosaic_0001>
module attributes {stable_mosaic.version = 11 : i64} {
  func.func @_mul_kernel(%arg0: i32, %arg1: memref<8x4992xf32, #tpu.memory_space<vmem>>, %arg2: memref<1x4992xf32, #tpu.memory_space<vmem>>, %arg3: memref<8x4992xf32, #tpu.memory_space<vmem>>) attributes {dimension_semantics = [#tpu.dimension_semantics<parallel>], iteration_bounds = array<i64: 2>, scalar_prefetch = 0 : i64, scratch_operands = 0 : i64, tpu.core_type = #tpu.core_type<tc>, window_params = [{transform_indices = @transform_0, window_bounds = array<i64: 8, 4992>}, {pipeline_mode = #tpu.pipeline_mode<synchronous>, transform_indices = @transform_1, window_bounds = array<i64: 1, 4992>}, {transform_indices = @transform_2, window_bounds = array<i64: 8, 4992>}]} {
    %c0 = arith.constant 0 : index
    %c0_0 = arith.constant 0 : index
    %0 = vector.load %arg1[%c0, %c0_0] : memref<8x4992xf32, #tpu.memory_space<vmem>>, vector<8x4992xf32>
    %c0_1 = arith.constant 0 : index
    %c0_2 = arith.constant 0 : index
    %1 = vector.load %arg2[%c0_1, %c0_2] : memref<1x4992xf32, #tpu.memory_space<vmem>>, vector<1x4992xf32>
    %2 = vector.broadcast %1 : vector<1x4992xf32> to vector<8x4992xf32>
    %3 = arith.mulf %0, %2 : vector<8x4992xf32>
    %c0_3 = arith.constant 0 : index
    %c0_4 = arith.constant 0 : index
    %4 = vector.load %arg3[%c0_3, %c0_4] : memref<8x4992xf32, #tpu.memory_space<vmem>>, vector<8x4992xf32>
    tpu.vector_store %arg3[%c0_3, %c0_4], %3 {strides = array<i32>} : memref<8x4992xf32, #tpu.memory_space<vmem>>, vector<8x4992xf32>,
    return
  }
  func.func @transform_0(%arg0: i32) -> (i32, i32) {
    %c0_i32 = arith.constant 0 : i32
    %c0_i32_0 = arith.constant 0 : i32
    return %arg0, %c0_i32 : i32, i32
  }
  func.func @transform_1(%arg0: i32) -> (i32, i32) {
    %c0_i32 = arith.constant 0 : i32
    %c0_i32_0 = arith.constant 0 : i32
    %c0_i32_1 = arith.constant 0 : i32
    return %c0_i32, %c0_i32_0 : i32, i32
  }
  func.func @transform_2(%arg0: i32) -> (i32, i32) {
    %c0_i32 = arith.constant 0 : i32
    %c0_i32_0 = arith.constant 0 : i32
    return %arg0, %c0_i32 : i32, i32
  }
}

</mosaic_0001>

<bundles_post_ra>
// kernel: tpu_custom_call.1
= control target key start
LH: loop header
LB: loop body
LE: loop exit
PB: predicated region body
PF: predicated region fallthrough
CT: control target
= control target key end

     0   :  { %7 = vsyncpa [#allocation3], 0  ;;  %s1152_s0 = inlined_call_operand.hbm [shape: f32[16,4992], index: 0, kind: input, shape index: {}]   ;;  %s1153_s1 = inlined_call_operand.hbm [shape: f32[1,4992], index: 1, kind: input, shape index: {}]   ;;  %s1154_s2 = inlined_call_operand.hbm [shape: f32[16,4992], index: 2, kind: output, shape index: {}]  }
   0x1   :  { %9 = vsyncpa [#allocation3 + $0x1], 0 }
   0x2   :  { %10 = vsyncpa [#allocation6], 0 }
   0x3   :  { %11 = vsyncpa [#allocation4], 0 }
   0x4   :  { %13 = vsyncpa [#allocation4 + $0x1], 0  ;;  %s809_s9 = smov 0   ;;  %s811_s10 = smov 0  }
   0x5   :  { %s813_s11 = smov 0   ;;  %s815_s12 = smov 0  }
   0x6 LB: > { %s830_s13 = sadd.s32 4294967295, %s789_s12   ;;  %s590_s14 = sadd.s32 4294967294, %s789_s12   ;;  %s789_s12 = sphi %s815_s12, %s1178_s12   ;;  %s785_s11 = sphi %s813_s11, %s1177_s11   ;;  %s781_s10 = sphi %s811_s10, %s1176_s10   ;;  %s777_s9 = sphi %s809_s9, %s1175_s9  }
   0x7   : > { %p39_p0 = scmp.ne.s32.totalorder %s781_s10, %s777_s9  ;;  %p1155_p1 = scmp.eq.s32.totalorder %s830_s13, 0 }
   0x8   : > { %p90_p3 = scmp.eq.s32.totalorder %s590_s14, 1  ;;  %p591_p5 = scmp.ge.s32.totalorder %s789_s12, 1 }
   0x9   : > { %p839_p4 = por %p1155_p1, %p39_p0  ;;  %p97_p7 = scmp.lt.s32.totalorder %s789_s12, 3 }
   0xa   : > { %p844_p6 = por %p90_p3, %p39_p0  ;;  %s791_s18 = smov [#allocation5]  }
   0xb   : > { %s1158_s15 = scalar_select %p839_p4, 1, 0 }
   0xc   : > { %s1159_s16 = scalar_select %p844_p6, 1, 0 }
   0xd   : > { %p849_p8 = pnand %p591_p5, %p97_p7  ;;  %s110_s19 = sshll.u32 %s791_s18, 4  ;;  %s111_s19 = int_to_ptr.vmem [resolvable:$true] %s110_s19 }
   0xe   : > { %s857_s20 = sadd.s32 1, %s789_s12   ;;  %s26_s24 = sadd.s32 1, %s785_s11 }
   0xf   : > { %s1160_s17 = scalar_select %p849_p8, 1, 0 }
  0x10   : > { %p612_p10 = pneg %p849_p8  ;;  %s23_s22 = ssub.s32 %s789_s12, %s857_s20 }
  0x11   : > { %p867_p12 = scmp.eq.s32.totalorder %s23_s22, 0  ;;  %s661_s27 = scalar_lea.hbm %s1153_s1, 624 }
  0x12   : > { %p861_p11 = pnand %p612_p10, %p1155_p1  ;;  %p662_p0 = scmp.ne.s32.totalorder %s1153_s1, %s661_s27 }
  0x13   : > { %s1162_s23 = scalar_select %p867_p12, 1, 0 }
  0x14   : > { %p663_p3 = pneg %p861_p11  ;;  %p668_p10 = scmp.lt.u32.totalorder %s661_s27, %s1153_s1 }
  0x16   : > { %p664_p5 = pnand %p663_p3, %p662_p0 }
  0x18   : > { %p665_p7 = pneg %p664_p5 }
  0x1a   : > { %p670_p9 = pnand %p668_p10, %p665_p7 }
  0x1c   : > { %673 = shalt.err (!%p670_p9)
}
  0x1d   : > { %s674_s4 = scalar_lea.vmem %s111_s19, 624  ;;  %s681_s5 = scalar_lea.vmem %s111_s19, 640 }
  0x1e   : > { %p675_p1 = scmp.ne.s32.totalorder %s111_s19, %s674_s4  ;;  %p682_p6 = scmp.lt.s32.totalorder %s111_s19, %s111_s19 }
  0x1f   : > { %p683_p4 = scmp.lt.s32.totalorder %s681_s5, %s674_s4 }
  0x20   : > { %p677_p2 = pnand %p675_p1, %p663_p3 }
  0x21   : > { %p684_p8 = por %p683_p4, %p682_p6 }
  0x22   : > { %p678_p13 = pneg %p677_p2 }
  0x24   : > { %p685_p12 = pnand %p684_p8, %p678_p13 }
  0x26   : > { %688 = shalt.err (!%p685_p12)
}
  0x27   : > { %615 = dma.hbm_to_vmem [thread:$0]  (!%p861_p11), %s1153_s1, 624, %s111_s19, [#allocation6]  }
  0x28   : > { %p1163_p1 = scmp.ne.s32.totalorder %s1162_s23, 0  ;;  %p34_p2 = scmp.eq.s32.totalorder %s789_s12, 0 }
  0x29   : > { %p1164_p4 = scmp.ne.s32.totalorder %s785_s11, %s781_s10  ;;  %p1165_p6 = scmp.eq.s32.totalorder %s830_s13, 1 }
  0x2a   : > { %s893_s8 = scalar_select %p1163_p1, %s785_s11, %s26_s24  }
  0x2b   : > { %p901_p8 = por %p1165_p6, %p1164_p4  ;;  %p625_p9 = scmp.lt.s32.totalorder %s789_s12, 2 }
  0x2c   : > { %s121_s18 = sand.u32 1, %s785_s11   ;;  %p1167_p12 = pmov %p1164_p4 }
  0x2d   : > { %s600_s21 = smul.u32 312, %s121_s18  ;;  %s122_s28 = scalar_lea.sflag [#allocation3], %s121_s18 }
  0x2e   : > { %p35_p13 = por %p34_p2, %p1167_p12  ;;  %s601_s22 = smul.u32 4992, %s789_s12 }
  0x2f   : > { %s125_s26 = scalar_lea.vmem [#allocation2], %s600_s21  ;;  %s694_s4 = scalar_lea.hbm %s1152_s0, 9984 }
  0x30   : > { %p911_p0 = pnand %p625_p9, %p35_p13  ;;  %s918_s24 = scalar_lea.hbm %s1152_s0, %s601_s22 }
  0x31   : > { %s133_s27 = sshll.u32 %s125_s26, 4  ;;  %s689_s29 = scalar_lea.hbm %s918_s24, 4992  ;;  %s920_s27 = int_to_ptr.vmem [resolvable:$true] %s133_s27 }
  0x32   : > { %p690_p11 = scmp.ne.s32.totalorder %s918_s24, %s689_s29  ;;  %p691_p3 = pneg %p911_p0 }
  0x33   : > { %p695_p10 = scmp.lt.u32.totalorder %s918_s24, %s1152_s0  ;;  %p696_p1 = scmp.lt.u32.totalorder %s694_s4, %s689_s29 }
  0x34   : > { %p692_p5 = pnand %p691_p3, %p690_p11  ;;  %p698_p4 = scmp.lt.u32.totalorder %s689_s29, %s918_s24 }
  0x35   : > { %p697_p2 = por %p696_p1, %p695_p10 }
  0x36   : > { %p693_p7 = pneg %p692_p5 }
  0x37   : > { %p699_p6 = por %p698_p4, %p697_p2 }
  0x39   : > { %p700_p9 = pnand %p699_p6, %p693_p7 }
  0x3b   : > { %703 = shalt.err (!%p700_p9)
}
  0x3c   : > { %s704_s7 = scalar_lea.vmem %s920_s27, 4992  ;;  %s792_s18 = smov [#allocation2]  }
  0x3d   : > { %p705_p12 = scmp.ne.s32.totalorder %s920_s27, %s704_s7  ;;  %s709_s21 = sshll.u32 %s792_s18, 4  ;;  %s710_s21 = int_to_ptr.vmem [resolvable:$false] %s709_s21 }
  0x3e   : > { %s711_s22 = scalar_lea.vmem %s710_s21, 9984  ;;  %p712_p5 = scmp.lt.s32.totalorder %s920_s27, %s710_s21 }
  0x3f   : > { %p707_p13 = pnand %p705_p12, %p691_p3  ;;  %p713_p10 = scmp.lt.s32.totalorder %s711_s22, %s704_s7 }
  0x41   : > { %p708_p11 = pneg %p707_p13  ;;  %p714_p1 = por %p713_p10, %p712_p5 }
  0x43   : > { %p715_p2 = pnand %p714_p1, %p708_p11 }
  0x45   : > { %718 = shalt.err (!%p715_p2)
}
  0x46   : > { %619 = dma.hbm_to_vmem [thread:$0]  (!%p911_p0), %s918_s24, 4992, %s920_s27, %s122_s28  }
  0x47   : > { %p1169_p7 = scmp.ne.s32.totalorder %s1160_s17, 0 }
  0x48   : > { %s950_s19 = sand.u32 (!%p1169_p7), 1, %s781_s10   ;;  %p1170_p3 = scmp.ne.s32.totalorder (!%p1169_p7), %s1158_s15, 0 }
  0x49   : > { %142 = sbr.rel (%p1169_p7) target bundleno = 130 (0x82), region = 28  ;;  %s145_s26 = scalar_lea.sflag (!%p1169_p7), [#allocation3], %s950_s19 }
  0x4a   : > { %s602_s23 = smul.u32 (!%p1169_p7), 312, %s950_s19 }
  0x4c   : > { %s956_s29 = scalar_lea.vmem (!%p1169_p7), [#allocation2], %s602_s23 }
  0x50   : > { %764 = dma.done.wait (%p1170_p3), %s145_s26, 4992  }
  0x51   : > { %766 = vsyncadd (%p1170_p3), %s145_s26, 4294962304  ;;  %p1171_p0 = scmp.eq.s32.totalorder %s830_s13, 0 }
  0x53   : > { %768 = dma.done.wait (%p1171_p0), [#allocation6], 624   ;;  %p1172_p4 = pmov %p1171_p0 }
  0x54   : > { %v222_v0 = vlaneseq  ;;  %v173_v10 = vld [vmem:[%s956_s29] sm:$0xff]  ;;  %v212_v11 = vld [vmem:[#allocation5] sm:$0xff]  ;;  %v174_v12 = vld [vmem:[%s956_s29 + $0x8] sm:$0xff]  ;;  %s1005_s15 = scalar_lea.vmem [#allocation7], %s602_s23  ;;  %s603_s17 = smul.u32 4992, %s830_s13 }
  0x55   : > { %770 = vsyncadd (%p1172_p4), [#allocation6], 4294966672  ;;  %v175_v15 = vld [vmem:[%s956_s29 + $0x10] sm:$0xff]  ;;  %v176_v17 = vld [vmem:[%s956_s29 + $0x18] sm:$0xff]  ;;  %s510_s25 = sshll.u32 %s1005_s15, 4  ;;  %s496_s28 = scalar_lea.sflag [#allocation4], %s950_s19  ;;  %s1103_s25 = int_to_ptr.vmem [resolvable:$true] %s510_s25 }
  0x56   : > { %v223_v1 = vshrl.u32 %v222_v0, 7  ;;  %v177_v19 = vld [vmem:[%s956_s29 + $0x20] sm:$0xff]  ;;  %v178_v21 = vld [vmem:[%s956_s29 + $0x28] sm:$0xff]  ;;  %v179_v23 = vld [vmem:[%s956_s29 + $0x30] sm:$0xff]  ;;  %s1101_s27 = scalar_lea.hbm %s1154_s2, %s603_s17  ;;  %s719_s30 = scalar_lea.vmem %s1103_s25, 4992 }
  0x57   : > { %v180_v25 = vld [vmem:[%s956_s29 + $0x38] sm:$0xff]  ;;  %v181_v31 = vld [vmem:[%s956_s29 + $0x40] sm:$0xff]  ;;  %v182_v33 = vld [vmem:[%s956_s29 + $0x48] sm:$0xff]  ;;  %p720_p6 = scmp.ne.s32.totalorder %s1103_s25, %s719_s30  ;;  %s793_s3 = smov [#allocation7]  }
  0x58   : > { %v966_v2 = vsub.s32 0, %v223_v1  ;;  %v968_v3 = vsub.s32 1, %v223_v1  ;;  %v970_v4 = vsub.s32 2, %v223_v1  ;;  %v972_v5 = vsub.s32 3, %v223_v1  ;;  %v213_v32 = vld [vmem:[#allocation5 + $0x8] sm:$0xff]  ;;  %v183_v38 = vld [vmem:[%s956_s29 + $0x50] sm:$0xff] }
  0x59   : > { %v974_v6 = vsub.s32 4, %v223_v1  ;;  %v976_v7 = vsub.s32 5, %v223_v1  ;;  %v978_v8 = vsub.s32 6, %v223_v1  ;;  %v980_v9 = vsub.s32 7, %v223_v1  ;;  %v184_v39 = vld [vmem:[%s956_s29 + $0x58] sm:$0xff]  ;;  %v185_v40 = vld [vmem:[%s956_s29 + $0x60] sm:$0xff]  ;;  %p721_p9 = pnand %p720_p6, %p901_p8 }
  0x5a   : > { %v225_v13 = vrot.slane %v212_v11, %v966_v2  ;;  %v229_v14 = vrot.slane %v212_v11, %v968_v3  ;;  %v233_v16 = vrot.slane %v212_v11, %v970_v4  ;;  %v237_v18 = vrot.slane %v212_v11, %v972_v5  ;;  %v186_v45 = vld [vmem:[%s956_s29 + $0x68] sm:$0xff]  ;;  %v187_v46 = vld [vmem:[%s956_s29 + $0x70] sm:$0xff]  ;;  %v188_v47 = vld [vmem:[%s956_s29 + $0x78] sm:$0xff]  ;;  %s723_s4 = sshll.u32 %s793_s3, 4  ;;  %s724_s4 = int_to_ptr.vmem [resolvable:$false] %s723_s4 }
  0x5b   : > { %v241_v20 = vrot.slane %v212_v11, %v974_v6  ;;  %v245_v22 = vrot.slane %v212_v11, %v976_v7  ;;  %v249_v24 = vrot.slane %v212_v11, %v978_v8  ;;  %v253_v26 = vrot.slane %v212_v11, %v980_v9  ;;  %v214_v52 = vld [vmem:[#allocation5 + $0x10] sm:$0xff]  ;;  %v191_v63 = vld [vmem:[%s956_s29 + $0x90] sm:$0xff]  ;;  %v192_v0 = vld [vmem:[%s956_s29 + $0x98] sm:$0xff]  ;;  %p722_p12 = pneg %p721_p9  ;;  %s725_s5 = scalar_lea.vmem %s724_s4, 9984 }
  0x5c   : > { %v417_v27 = vmul.f32 %v225_v13, %v173_v10  ;;  %v418_v28 = vmul.f32 %v229_v14, %v174_v12  ;;  %v419_v29 = vmul.f32 %v233_v16, %v175_v15  ;;  %v420_v30 = vmul.f32 %v237_v18, %v176_v17  ;;  %v189_v57 = vld [vmem:[%s956_s29 + $0x80] sm:$0xff]  ;;  %v190_v58 = vld [vmem:[%s956_s29 + $0x88] sm:$0xff]  ;;  %v195_v15 = vld [vmem:[%s956_s29 + $0xb0] sm:$0xff]  ;;  %p726_p13 = scmp.lt.s32.totalorder %s1103_s25, %s724_s4  ;;  %p727_p11 = scmp.lt.s32.totalorder %s725_s5, %s719_s30 }
  0x5d   : > { %v421_v34 = vmul.f32 %v241_v20, %v177_v19  ;;  %v422_v35 = vmul.f32 %v245_v22, %v178_v21  ;;  %v423_v36 = vmul.f32 %v249_v24, %v179_v23  ;;  %v424_v37 = vmul.f32 %v253_v26, %v180_v25  ;;  %v193_v1 = vld [vmem:[%s956_s29 + $0xa0] sm:$0xff]  ;;  %v194_v14 = vld [vmem:[%s956_s29 + $0xa8] sm:$0xff]  ;;  %v196_v16 = vld [vmem:[%s956_s29 + $0xb8] sm:$0xff] }
  0x5e   : > { %456 = vst [vmem:[%s1005_s15] sm:$0xff] %v417_v27  ;;  %457 = vst [vmem:[%s1005_s15 + $0x8] sm:$0xff] %v418_v28  ;;  %v257_v41 = vrot.slane %v213_v32, %v966_v2  ;;  %v261_v42 = vrot.slane %v213_v32, %v968_v3  ;;  %v265_v43 = vrot.slane %v213_v32, %v970_v4  ;;  %v215_v21 = vld [vmem:[#allocation5 + $0x18] sm:$0xff]  ;;  %v197_v26 = vld [vmem:[%s956_s29 + $0xc0] sm:$0xff]  ;;  %p728_p5 = por %p727_p11, %p726_p13 }
  0x5f   : > { %458 = vst [vmem:[%s1005_s15 + $0x10] sm:$0xff] %v419_v29  ;;  %459 = vst [vmem:[%s1005_s15 + $0x18] sm:$0xff] %v420_v30  ;;  %v269_v44 = vrot.slane %v213_v32, %v972_v5  ;;  %v273_v48 = vrot.slane %v213_v32, %v974_v6  ;;  %v277_v49 = vrot.slane %v213_v32, %v976_v7  ;;  %v198_v27 = vld [vmem:[%s956_s29 + $0xc8] sm:$0xff] }
  0x60   : > { %460 = vst [vmem:[%s1005_s15 + $0x20] sm:$0xff] %v421_v34  ;;  %461 = vst [vmem:[%s1005_s15 + $0x28] sm:$0xff] %v422_v35  ;;  %v281_v50 = vrot.slane %v213_v32, %v978_v8  ;;  %v285_v51 = vrot.slane %v213_v32, %v980_v9  ;;  %v425_v53 = vmul.f32 %v257_v41, %v181_v31  ;;  %v199_v32 = vld [vmem:[%s956_s29 + $0xd0] sm:$0xff]  ;;  %v201_v34 = vld [vmem:[%s956_s29 + $0xe0] sm:$0xff]  ;;  %p729_p10 = pnand %p728_p5, %p722_p12 }
  0x61   : > { %462 = vst [vmem:[%s1005_s15 + $0x30] sm:$0xff] %v423_v36  ;;  %463 = vst [vmem:[%s1005_s15 + $0x38] sm:$0xff] %v424_v37  ;;  %v426_v54 = vmul.f32 %v261_v42, %v182_v33  ;;  %v427_v55 = vmul.f32 %v265_v43, %v183_v38  ;;  %v428_v56 = vmul.f32 %v269_v44, %v184_v39  ;;  %v200_v33 = vld [vmem:[%s956_s29 + $0xd8] sm:$0xff]  ;;  %v202_v39 = vld [vmem:[%s956_s29 + $0xe8] sm:$0xff] }
  0x62   : > { %v429_v59 = vmul.f32 %v273_v48, %v185_v40  ;;  %v430_v60 = vmul.f32 %v277_v49, %v186_v45  ;;  %v431_v61 = vmul.f32 %v281_v50, %v187_v46  ;;  %v432_v62 = vmul.f32 %v285_v51, %v188_v47  ;;  %464 = vst [vmem:[%s1005_s15 + $0x40] sm:$0xff] %v425_v53  ;;  %v203_v40 = vld [vmem:[%s956_s29 + $0xf0] sm:$0xff]  ;;  %v204_v41 = vld [vmem:[%s956_s29 + $0xf8] sm:$0xff]  ;;  %v205_v51 = vld [vmem:[%s956_s29 + $0x100] sm:$0xff] }
  0x63   : > { %465 = vst [vmem:[%s1005_s15 + $0x48] sm:$0xff] %v426_v54  ;;  %466 = vst [vmem:[%s1005_s15 + $0x50] sm:$0xff] %v427_v55  ;;  %v289_v10 = vrot.slane %v214_v52, %v966_v2  ;;  %v293_v11 = vrot.slane %v214_v52, %v968_v3  ;;  %v297_v12 = vrot.slane %v214_v52, %v970_v4  ;;  %v216_v46 = vld [vmem:[#allocation5 + $0x20] sm:$0xff] }
  0x64   : > { %467 = vst [vmem:[%s1005_s15 + $0x58] sm:$0xff] %v428_v56  ;;  %v301_v13 = vrot.slane %v214_v52, %v972_v5  ;;  %468 = vst [vmem:[%s1005_s15 + $0x60] sm:$0xff] %v429_v59  ;;  %v305_v17 = vrot.slane %v214_v52, %v974_v6  ;;  %v309_v18 = vrot.slane %v214_v52, %v976_v7  ;;  %v206_v56 = vld [vmem:[%s956_s29 + $0x108] sm:$0xff] }
  0x65   : > { %469 = vst [vmem:[%s1005_s15 + $0x68] sm:$0xff] %v430_v60  ;;  %470 = vst [vmem:[%s1005_s15 + $0x70] sm:$0xff] %v431_v61  ;;  %v313_v19 = vrot.slane %v214_v52, %v978_v8  ;;  %v317_v20 = vrot.slane %v214_v52, %v980_v9  ;;  %v433_v22 = vmul.f32 %v289_v10, %v189_v57  ;;  %v208_v57 = vld [vmem:[%s956_s29 + $0x118] sm:$0xff] }
  0x66   : > { %471 = vst [vmem:[%s1005_s15 + $0x78] sm:$0xff] %v432_v62  ;;  %v434_v23 = vmul.f32 %v293_v11, %v190_v58  ;;  %v435_v24 = vmul.f32 %v297_v12, %v191_v63  ;;  %v436_v25 = vmul.f32 %v301_v13, %v192_v0  ;;  %v437_v28 = vmul.f32 %v305_v17, %v193_v1  ;;  %v209_v62 = vld [vmem:[%s956_s29 + $0x120] sm:$0xff]  ;;  %v210_v63 = vld [vmem:[%s956_s29 + $0x128] sm:$0xff]  ;;  %v211_v0 = vld [vmem:[%s956_s29 + $0x130] sm:$0xff] }
  0x67   : > { %v438_v29 = vmul.f32 %v309_v18, %v194_v14  ;;  %v439_v30 = vmul.f32 %v313_v19, %v195_v15  ;;  %v440_v31 = vmul.f32 %v317_v20, %v196_v16  ;;  %472 = vst [vmem:[%s1005_s15 + $0x80] sm:$0xff] %v433_v22  ;;  %v321_v35 = vrot.slane %v215_v21, %v966_v2 }
  0x68   : > { %473 = vst [vmem:[%s1005_s15 + $0x88] sm:$0xff] %v434_v23  ;;  %474 = vst [vmem:[%s1005_s15 + $0x90] sm:$0xff] %v435_v24  ;;  %v325_v36 = vrot.slane %v215_v21, %v968_v3  ;;  %v329_v37 = vrot.slane %v215_v21, %v970_v4  ;;  %v333_v38 = vrot.slane %v215_v21, %v972_v5 }
  0x69   : > { %475 = vst [vmem:[%s1005_s15 + $0x98] sm:$0xff] %v436_v25  ;;  %476 = vst [vmem:[%s1005_s15 + $0xa0] sm:$0xff] %v437_v28  ;;  %v337_v42 = vrot.slane %v215_v21, %v974_v6  ;;  %v341_v43 = vrot.slane %v215_v21, %v976_v7  ;;  %v345_v44 = vrot.slane %v215_v21, %v978_v8 }
  0x6a   : > { %477 = vst [vmem:[%s1005_s15 + $0xa8] sm:$0xff] %v438_v29  ;;  %478 = vst [vmem:[%s1005_s15 + $0xb0] sm:$0xff] %v439_v30  ;;  %v349_v45 = vrot.slane %v215_v21, %v980_v9  ;;  %v441_v47 = vmul.f32 %v321_v35, %v197_v26  ;;  %v442_v48 = vmul.f32 %v325_v36, %v198_v27  ;;  %v207_v9 = vld [vmem:[%s956_s29 + $0x110] sm:$0xff] }
  0x6b   : > { %479 = vst [vmem:[%s1005_s15 + $0xb8] sm:$0xff] %v440_v31  ;;  %v443_v49 = vmul.f32 %v329_v37, %v199_v32  ;;  %v444_v50 = vmul.f32 %v333_v38, %v200_v33  ;;  %v445_v52 = vmul.f32 %v337_v42, %v201_v34  ;;  %v446_v53 = vmul.f32 %v341_v43, %v202_v39 }
  0x6c   : > { %v447_v54 = vmul.f32 %v345_v44, %v203_v40  ;;  %v448_v55 = vmul.f32 %v349_v45, %v204_v41  ;;  %480 = vst [vmem:[%s1005_s15 + $0xc0] sm:$0xff] %v441_v47  ;;  %481 = vst [vmem:[%s1005_s15 + $0xc8] sm:$0xff] %v442_v48  ;;  %v353_v58 = vrot.slane %v216_v46, %v966_v2 }
  0x6d   : > { %482 = vst [vmem:[%s1005_s15 + $0xd0] sm:$0xff] %v443_v49  ;;  %483 = vst [vmem:[%s1005_s15 + $0xd8] sm:$0xff] %v444_v50  ;;  %v357_v59 = vrot.slane %v216_v46, %v968_v3  ;;  %v361_v60 = vrot.slane %v216_v46, %v970_v4  ;;  %v365_v61 = vrot.slane %v216_v46, %v972_v5 }
  0x6e   : > { %484 = vst [vmem:[%s1005_s15 + $0xe0] sm:$0xff] %v445_v52  ;;  %485 = vst [vmem:[%s1005_s15 + $0xe8] sm:$0xff] %v446_v53  ;;  %v369_v2 = vrot.slane %v216_v46, %v974_v6  ;;  %v373_v3 = vrot.slane %v216_v46, %v976_v7  ;;  %v377_v4 = vrot.slane %v216_v46, %v978_v8 }
  0x6f   : > { %486 = vst [vmem:[%s1005_s15 + $0xf0] sm:$0xff] %v447_v54  ;;  %487 = vst [vmem:[%s1005_s15 + $0xf8] sm:$0xff] %v448_v55  ;;  %v449_v5 = vmul.f32 %v353_v58, %v205_v51  ;;  %v450_v1 = vmul.f32 %v357_v59, %v206_v56  ;;  %v451_v10 = vmul.f32 %v361_v60, %v207_v9 }
  0x70   : > { %v452_v11 = vmul.f32 %v365_v61, %v208_v57  ;;  %v453_v12 = vmul.f32 %v369_v2, %v209_v62  ;;  %v454_v13 = vmul.f32 %v373_v3, %v210_v63  ;;  %v455_v14 = vmul.f32 %v377_v4, %v211_v0 }
  0x71   : > { %488 = vst [vmem:[%s1005_s15 + $0x100] sm:$0xff] %v449_v5  ;;  %489 = vst [vmem:[%s1005_s15 + $0x108] sm:$0xff] %v450_v1 }
  0x72   : > { %490 = vst [vmem:[%s1005_s15 + $0x110] sm:$0xff] %v451_v10  ;;  %491 = vst [vmem:[%s1005_s15 + $0x118] sm:$0xff] %v452_v11 }
  0x73   : > { %492 = vst [vmem:[%s1005_s15 + $0x120] sm:$0xff] %v453_v12  ;;  %493 = vst [vmem:[%s1005_s15 + $0x128] sm:$0xff] %v454_v13 }
  0x74   : > { %494 = vst [vmem:[%s1005_s15 + $0x130] sm:$0xff] %v455_v14 }
  0x75   : > { %732 = shalt.err (!%p729_p10)
}
  0x76   : > { %s733_s6 = scalar_lea.hbm %s1101_s27, 4992  ;;  %s737_s21 = scalar_lea.hbm %s1154_s2, 9984 }
  0x77   : > { %p734_p1 = scmp.ne.s32.totalorder %s1101_s27, %s733_s6  ;;  %p738_p3 = scmp.lt.u32.totalorder %s1101_s27, %s1154_s2 }
  0x78   : > { %p739_p0 = scmp.lt.u32.totalorder %s737_s21, %s733_s6  ;;  %p741_p6 = scmp.lt.u32.totalorder %s733_s6, %s1101_s27 }
  0x79   : > { %p735_p2 = pnand %p734_p1, %p901_p8 }
  0x7a   : > { %p740_p4 = por %p739_p0, %p738_p3 }
  0x7b   : > { %p736_p7 = pneg %p735_p2 }
  0x7c   : > { %p742_p9 = por %p741_p6, %p740_p4 }
  0x7e   : > { %p743_p12 = pnand %p742_p9, %p736_p7 }
  0x80   : > { %746 = shalt.err (!%p743_p12)
}
  0x81   : > { %610 = dma.vmem_to_hbm [thread:$0]  (%p901_p8), %s1103_s25, 4992, %s1101_s27, %s496_s28  }
  0x82 PF: > { %s522_s23 = sand.u32 1, %s777_s9   ;;  %p1173_p13 = scmp.ne.s32.totalorder %s1159_s16, 0 }
  0x83   : > { %p1174_p11 = scmp.ge.s32.totalorder %s789_s12, 2  ;;  %s523_s26 = scalar_lea.sflag [#allocation4], %s522_s23 }
  0x85   : > { %p621_p5 = pnand %p1174_p11, %p1173_p13 }
  0x87   : > { %772 = dma.done.wait (!%p621_p5), %s523_s26, 4992  }
  0x88   : > { %774 = vsyncadd (!%p621_p5), %s523_s26, 4294962304  ;;  %p16_p10 = scmp.ge.s32.totalorder %s857_s20, 4   ;;  %s1175_s9 = smov %s781_s10 }
  0x89   : > { %s1176_s10 = smov %s785_s11  ;;  %s1177_s11 = smov %s893_s8 }
  0x8a   : > { %s1178_s12 = smov %s857_s20  ;;  %18 = sbr.rel (!%p16_p10) target bundleno = 6 (0x6), region = 77 }
  0x91   :  { %528 = vsyncpa [#allocation3], 1 }
  0x92   :  { %530 = vsyncpa [#allocation3 + $0x1], 1 }
  0x93   :  { %531 = vsyncpa [#allocation6], 1 }
  0x94   :  { %532 = vsyncpa [#allocation4], 1 }
  0x95   :  { %534 = vsyncpa [#allocation4 + $0x1], 1 }

</bundles_post_ra>
